<compile_context>
chip_gen: v7x
topology: tpu7x:2x2x1
jax: 0.10.0
libtpu: 0.0.40
codegen_flags: <defaults>
</compile_context>

<pallas_src>
import jax
import jax.numpy as jnp
from jax.experimental import pallas as pl
from jax.experimental.pallas import tpu as pltpu


# -----------------------------------------------------------------------------
# Kernel
# -----------------------------------------------------------------------------
def question_network_kernel(fv_ref, q_ref, w1i_ref, w1q_ref, b1_ref,
                            w2_ref, b2_ref, out_ref):
    """Two-branch MLP fused into 3 MXU pushes + VPU/XLU epilogue.

    Layer 1: h = relu(fv @ W1_img + q @ W1_qa + b1)        (B, h_img+h_aq)
    Layer 2: z = relu(h @ blockdiag(W2_img, W2_qa) + b2)   (B, 2H) = [img|aq]
    Combine: g = relu(z[:, :H] + z[:, H:]) via lane roll, store (1, 1, B, H).
    """
    # Layer 1: two accumulated MXU matmuls (K=img_size and K=aq_size), f32 acc.
    h = jnp.dot(fv_ref[...], w1i_ref[...], preferred_element_type=jnp.float32)
    h = h + jnp.dot(q_ref[...], w1q_ref[...], preferred_element_type=jnp.float32)
    h = jnp.maximum(h + b1_ref[...], 0.0)

    # Layer 2: one block-diagonal MXU matmul -> lane-dense (B, 2H) intermediate.
    z = jnp.dot(h, w2_ref[...], preferred_element_type=jnp.float32)
    z = jnp.maximum(z + b2_ref[...], 0.0)

    # Align the two H-wide halves with a lane roll (XLU slot, never saturated).
    # Both halves are exactly H wide, so roll-by-half is direction agnostic.
    H = z.shape[-1] // 2
    z_rolled = pltpu.roll(z, shift=H, axis=1)  # positive axis: pltpu.roll rejects -1
    g = jnp.maximum(z + z_rolled, 0.0)

    # Emit g_t.unsqueeze(0).unsqueeze(0) directly: one masked vst of (B, H).
    out_ref[0, 0] = g[:, :H].astype(out_ref.dtype)


# -----------------------------------------------------------------------------
# Wrapper
# -----------------------------------------------------------------------------
def question_network(question, feature_vector, packed_params):
    """Forward pass. packed_params = (w1_img, w1_qa, b1, w2, b2) from pack_params()."""
    w1_img, w1_qa, b1, w2, b2 = packed_params
    B = question.shape[0]
    H2 = w2.shape[1]          # 2 * (hidden_size_img + hidden_size_answer_question)
    H = H2 // 2

    # Advisory cost hint: tiny kernel, let XLA overlap it with neighbors.
    flops = 2 * B * (feature_vector.shape[1] * w1_img.shape[1]
                     + question.shape[1] * w1_qa.shape[1]
                     + w2.shape[0] * H2)
    bytes_accessed = 4 * (feature_vector.size + question.size + w1_img.size
                          + w1_qa.size + b1.size + w2.size + b2.size + B * H)

    vmem = pl.BlockSpec(memory_space=pltpu.MemorySpace.VMEM)
    return pl.pallas_call(
        question_network_kernel,
        out_shape=jax.ShapeDtypeStruct((1, 1, B, H), jnp.float32),
        in_specs=[vmem, vmem, vmem, vmem, vmem, vmem, vmem],
        out_specs=vmem,
        cost_estimate=pl.CostEstimate(flops=flops, transcendentals=0,
                                      bytes_accessed=bytes_accessed),
    )(feature_vector, question, w1_img, w1_qa, b1, w2, b2)


question_network_jit = jax.jit(question_network)


# -----------------------------------------------------------------------------
# Parameter init (PyTorch nn.Linear-style) and packing
# -----------------------------------------------------------------------------
def init_params(key, img_size, answer_question_size, hidden_size_img, hidden_size_aq):
    """Weights stored pre-transposed: shape (in_features, out_features)."""
    H = hidden_size_img + hidden_size_aq
    keys = jax.random.split(key, 8)

    def lin(kw, kb, fan_in, fan_out):
        bound = 1.0 / jnp.sqrt(fan_in)
        w = jax.random.uniform(kw, (fan_in, fan_out), jnp.float32, -bound, bound)
        b = jax.random.uniform(kb, (1, fan_out), jnp.float32, -bound, bound)
        return w, b

    w_img1, b_img1 = lin(keys[0], keys[1], img_size, hidden_size_img)
    w_img2, b_img2 = lin(keys[2], keys[3], hidden_size_img, H)
    w_qa1, b_qa1 = lin(keys[4], keys[5], answer_question_size, hidden_size_aq)
    w_qa2, b_qa2 = lin(keys[6], keys[7], hidden_size_aq, H)

    return dict(
        w_img1=w_img1, b_img1=b_img1,
        w_img2=w_img2, b_img2=b_img2,
        w_qa1=w_qa1, b_qa1=b_qa1,
        w_qa2=w_qa2, b_qa2=b_qa2,
    )


def pack_params(p):
    """One-time packing: layer-1 branch weights column-padded to a common output
    width (so the kernel accumulates two MXU pushes without an input concat),
    layer-2 weights block-diagonal over 2H output lanes."""
    img_size, h_img = p["w_img1"].shape
    aq_size, h_aq = p["w_qa1"].shape
    H = p["w_img2"].shape[1]            # hidden_size_img + hidden_size_answer_question
    assert H == h_img + h_aq, "roll-by-half trick requires equal H-wide halves"

    hsum = h_img + h_aq
    # Layer 1: each branch writes its own column block; the other block is zero.
    w1_img = jnp.zeros((img_size, hsum), jnp.float32).at[:, :h_img].set(p["w_img1"])
    w1_qa = jnp.zeros((aq_size, hsum), jnp.float32).at[:, h_img:].set(p["w_qa1"])
    b1 = jnp.concatenate([p["b_img1"], p["b_qa1"]], axis=1)          # (1, hsum)

    # Layer 2: block-diagonal -> output lanes = [img_pre | aq_pre] (each H wide).
    w2 = jnp.zeros((hsum, 2 * H), jnp.float32)
    w2 = w2.at[:h_img, :H].set(p["w_img2"])
    w2 = w2.at[h_img:, H:].set(p["w_qa2"])
    b2 = jnp.concatenate([p["b_img2"], p["b_qa2"]], axis=1)          # (1, 2H)

    return w1_img, w1_qa, b1, w2, b2


# -----------------------------------------------------------------------------
# Pure-JAX reference (uses the ORIGINAL per-branch weights, PyTorch semantics)
# -----------------------------------------------------------------------------
def reference(question, feature_vector, p):
    img = jax.nn.relu(feature_vector @ p["w_img1"] + p["b_img1"])
    img = jax.nn.relu(img @ p["w_img2"] + p["b_img2"])
    aq = jax.nn.relu(question @ p["w_qa1"] + p["b_qa1"])
    aq = jax.nn.relu(aq @ p["w_qa2"] + p["b_qa2"])
    g = jax.nn.relu(img + aq)
    return g[None, None]


if __name__ == "__main__":
    # Small shapes consistent with the module's forward.
    B = 8
    img_size = 64
    answer_question_size = 32
    hidden_size_img = 32
    hidden_size_aq = 32
    H = hidden_size_img + hidden_size_aq

    key = jax.random.PRNGKey(0)
    k_params, k_q, k_fv = jax.random.split(key, 3)

    params = init_params(k_params, img_size, answer_question_size,
                         hidden_size_img, hidden_size_aq)
    packed = pack_params(params)

    question = jax.random.normal(k_q, (B, answer_question_size), jnp.float32)
    feature_vector = jax.random.normal(k_fv, (B, img_size), jnp.float32)

    g_t = question_network_jit(question, feature_vector, packed)
    g_t = jax.block_until_ready(g_t)

    expected = reference(question, feature_vector, params)
    assert g_t.shape == (1, 1, B, H), g_t.shape
    assert jnp.allclose(g_t, expected, atol=1e-3, rtol=1e-3), "mismatch vs reference"

    print("KERNEL_OK")
</pallas_src>

<mosaic_0001>
module attributes {stable_mosaic.version = 11 : i64} {
  func.func @question_network_kernel(%arg0: memref<8x64xf32, #tpu.memory_space<vmem>>, %arg1: memref<8x32xf32, #tpu.memory_space<vmem>>, %arg2: memref<64x64xf32, #tpu.memory_space<vmem>>, %arg3: memref<32x64xf32, #tpu.memory_space<vmem>>, %arg4: memref<1x64xf32, #tpu.memory_space<vmem>>, %arg5: memref<64x128xf32, #tpu.memory_space<vmem>>, %arg6: memref<1x128xf32, #tpu.memory_space<vmem>>, %arg7: memref<1x1x8x64xf32, #tpu.memory_space<vmem>>) attributes {dimension_semantics = [], scalar_prefetch = 0 : i64, scratch_operands = 0 : i64, tpu.core_type = #tpu.core_type<tc>} {
    %c0 = arith.constant 0 : index
    %c0_0 = arith.constant 0 : index
    %0 = vector.load %arg0[%c0, %c0_0] : memref<8x64xf32, #tpu.memory_space<vmem>>, vector<8x64xf32>
    %c0_1 = arith.constant 0 : index
    %c0_2 = arith.constant 0 : index
    %1 = vector.load %arg2[%c0_1, %c0_2] : memref<64x64xf32, #tpu.memory_space<vmem>>, vector<64x64xf32>
    %cst = arith.constant dense<0.000000e+00> : vector<8x64xf32>
    %2 = tpu.matmul %0, %1, %cst {dimension_numbers = #tpu.dot_dimension_numbers<[1], [0], [0], [1], [0, 0, 1, 1], [], []>} : vector<8x64xf32>, vector<64x64xf32>, vector<8x64xf32> -> vector<8x64xf32>
    %c0_3 = arith.constant 0 : index
    %c0_4 = arith.constant 0 : index
    %3 = vector.load %arg1[%c0_3, %c0_4] : memref<8x32xf32, #tpu.memory_space<vmem>>, vector<8x32xf32>
    %c0_5 = arith.constant 0 : index
    %c0_6 = arith.constant 0 : index
    %4 = vector.load %arg3[%c0_5, %c0_6] : memref<32x64xf32, #tpu.memory_space<vmem>>, vector<32x64xf32>
    %cst_7 = arith.constant dense<0.000000e+00> : vector<8x64xf32>
    %5 = tpu.matmul %3, %4, %cst_7 {dimension_numbers = #tpu.dot_dimension_numbers<[1], [0], [0], [1], [0, 0, 1, 1], [], []>} : vector<8x32xf32>, vector<32x64xf32>, vector<8x64xf32> -> vector<8x64xf32>
    %6 = arith.addf %2, %5 : vector<8x64xf32>
    %c0_8 = arith.constant 0 : index
    %c0_9 = arith.constant 0 : index
    %7 = vector.load %arg4[%c0_8, %c0_9] : memref<1x64xf32, #tpu.memory_space<vmem>>, vector<1x64xf32>
    %8 = vector.broadcast %7 : vector<1x64xf32> to vector<8x64xf32>
    %9 = arith.addf %6, %8 : vector<8x64xf32>
    %cst_10 = arith.constant 0.000000e+00 : f32
    %10 = vector.broadcast %cst_10 : f32 to vector<8x64xf32>
    %11 = arith.maximumf %9, %10 : vector<8x64xf32>
    %c0_11 = arith.constant 0 : index
    %c0_12 = arith.constant 0 : index
    %12 = vector.load %arg5[%c0_11, %c0_12] : memref<64x128xf32, #tpu.memory_space<vmem>>, vector<64x128xf32>
    %cst_13 = arith.constant dense<0.000000e+00> : vector<8x128xf32>
    %13 = tpu.matmul %11, %12, %cst_13 {dimension_numbers = #tpu.dot_dimension_numbers<[1], [0], [0], [1], [0, 0, 1, 1], [], []>} : vector<8x64xf32>, vector<64x128xf32>, vector<8x128xf32> -> vector<8x128xf32>
    %c0_14 = arith.constant 0 : index
    %c0_15 = arith.constant 0 : index
    %14 = vector.load %arg6[%c0_14, %c0_15] : memref<1x128xf32, #tpu.memory_space<vmem>>, vector<1x128xf32>
    %15 = vector.broadcast %14 : vector<1x128xf32> to vector<8x128xf32>
    %16 = arith.addf %13, %15 : vector<8x128xf32>
    %cst_16 = arith.constant 0.000000e+00 : f32
    %17 = vector.broadcast %cst_16 : f32 to vector<8x128xf32>
    %18 = arith.maximumf %16, %17 : vector<8x128xf32>
    %c64_i32 = arith.constant 64 : i32
    %19 = tpu.dynamic_rotate %18 by %c64_i32 dim 1 : vector<8x128xf32>, i32 -> vector<8x128xf32>
    %20 = arith.addf %18, %19 : vector<8x128xf32>
    %cst_17 = arith.constant 0.000000e+00 : f32
    %21 = vector.broadcast %cst_17 : f32 to vector<8x128xf32>
    %22 = arith.maximumf %20, %21 : vector<8x128xf32>
    %23 = vector.extract_strided_slice %22 {offsets = [0, 0], sizes = [8, 64], strides = [1, 1]} : vector<8x128xf32> to vector<8x64xf32>
    %c0_18 = arith.constant 0 : index
    %c0_19 = arith.constant 0 : index
    %c0_20 = arith.constant 0 : index
    %c0_21 = arith.constant 0 : index
    %24 = vector.load %arg7[%c0_18, %c0_19, %c0_20, %c0_21] : memref<1x1x8x64xf32, #tpu.memory_space<vmem>>, vector<1x1x8x64xf32>
    %25 = vector.shape_cast %24 : vector<1x1x8x64xf32> to vector<8x64xf32>
    %26 = vector.shape_cast %23 : vector<8x64xf32> to vector<1x1x8x64xf32>
    tpu.vector_store %arg7[%c0_18, %c0_19, %c0_20, %c0_21], %26 {strides = array<i32>} : memref<1x1x8x64xf32, #tpu.memory_space<vmem>>, vector<1x1x8x64xf32>,
    return
  }
}

</mosaic_0001>

<bundles_post_ra>
// kernel: question_network.1
= control target key start
LH: loop header
LB: loop body
LE: loop exit
PB: predicated region body
PF: predicated region fallthrough
CT: control target
= control target key end

     0   :  { %12 = vsyncpa [#allocation3], 0  ;;  %s777_s0 = inlined_call_operand.hbm [shape: f32[8,64], index: 0, kind: input, shape index: {}]   ;;  %s778_s1 = inlined_call_operand.hbm [shape: f32[8,32], index: 1, kind: input, shape index: {}]   ;;  %s779_s2 = inlined_call_operand.hbm [shape: f32[64,64], index: 2, kind: input, shape index: {}]   ;;  %s780_s3 = inlined_call_operand.hbm [shape: f32[32,64], index: 3, kind: input, shape index: {}]   ;;  %s781_s4 = inlined_call_operand.vmem [shape: f32[1,64], index: 4, kind: input, shape index: {}]   ;;  %s782_s5 = inlined_call_operand.hbm [shape: f32[64,128], index: 5, kind: input, shape index: {}]   ;;  %s783_s6 = inlined_call_operand.vmem [shape: f32[1,128], index: 6, kind: input, shape index: {}]   ;;  %s784_s7 = inlined_call_operand.hbm [shape: f32[1,1,8,64], index: 7, kind: output, shape index: {}]  }
   0x1   :  { %13 = vsyncpa [#allocation6], 0 }
   0x2   :  { %14 = vsyncpa [#allocation9], 0 }
   0x3   :  { %15 = vsyncpa [#allocation4], 0  ;;  %s632_s24 = smov [#allocation5]   ;;  %s492_s28 = scalar_lea.hbm %s778_s1, 128 }
   0x4   :  { %s32_s25 = sshll.u32 %s632_s24, 4  ;;  %p493_p0 = scmp.ne.s32.totalorder %s778_s1, %s492_s28  ;;  %s33_s25 = int_to_ptr.vmem [resolvable:$true] %s32_s25 }
   0x5   :  { %p496_p1 = scmp.lt.u32.totalorder %s492_s28, %s778_s1 }
   0x7   :  { %p498_p2 = pnand %p496_p1, %p493_p0 }
   0x9   :  { %501 = shalt.err (!%p498_p2)
}
   0xa   :  { %s502_s10 = scalar_lea.vmem %s33_s25, 128  ;;  %p507_p4 = scmp.lt.s32.totalorder %s33_s25, %s33_s25 }
   0xb   :  { %p503_p3 = scmp.ne.s32.totalorder %s33_s25, %s502_s10  ;;  %p508_p5 = scmp.lt.s32.totalorder %s502_s10, %s502_s10 }
   0xd   :  { %p509_p6 = por %p508_p5, %p507_p4 }
   0xf   :  { %p510_p7 = pnand %p509_p6, %p503_p3 }
  0x11   :  { %513 = shalt.err (!%p510_p7)
}
  0x12   :  { %35 = dma.hbm_to_vmem [thread:$0]  %s778_s1, 128, %s33_s25, [#allocation6]  }
  0x13   :  { %s633_s13 = smov [#allocation8]   ;;  %s634_s15 = smov [#allocation2]  }
  0x14   :  { %s53_s14 = sshll.u32 %s633_s13, 4  ;;  %s22_s16 = sshll.u32 %s634_s15, 4  ;;  %s54_s14 = int_to_ptr.vmem [resolvable:$true] %s53_s14  ;;  %s23_s16 = int_to_ptr.vmem [resolvable:$true] %s22_s16 }
  0x15   :  { %s514_s19 = scalar_lea.hbm %s780_s3, 512 }
  0x16   :  { %p515_p8 = scmp.ne.s32.totalorder %s780_s3, %s514_s19  ;;  %p518_p9 = scmp.lt.u32.totalorder %s514_s19, %s780_s3 }
  0x18   :  { %p520_p10 = pnand %p518_p9, %p515_p8 }
  0x1a   :  { %523 = shalt.err (!%p520_p10)
}
  0x1b   :  { %s524_s1 = scalar_lea.vmem %s54_s14, 512  ;;  %p529_p12 = scmp.lt.s32.totalorder %s54_s14, %s54_s14 }
  0x1c   :  { %p525_p11 = scmp.ne.s32.totalorder %s54_s14, %s524_s1  ;;  %p530_p13 = scmp.lt.s32.totalorder %s524_s1, %s524_s1 }
  0x1e   :  { %p531_p0 = por %p530_p13, %p529_p12 }
  0x20   :  { %p532_p1 = pnand %p531_p0, %p525_p11 }
  0x22   :  { %535 = shalt.err (!%p532_p1)
}
  0x23   :  { %s635_s24 = smov 128   ;;  %s636_s25 = smov 8  }
  0x24   :  { %59 = dma.hbm_to_vmem [thread:$0]  %s780_s3, 512, %s54_s14, [#allocation9], %s635_s24, %s635_s24, %s636_s25  }
  0x25   :  { %s536_s30 = scalar_lea.hbm %s777_s0, 128 }
  0x26   :  { %p537_p2 = scmp.ne.s32.totalorder %s777_s0, %s536_s30  ;;  %p540_p3 = scmp.lt.u32.totalorder %s536_s30, %s777_s0 }
  0x28   :  { %p542_p4 = pnand %p540_p3, %p537_p2 }
  0x2a   :  { %545 = shalt.err (!%p542_p4)
}
  0x2b   :  { %s546_s12 = scalar_lea.vmem %s23_s16, 128  ;;  %p551_p6 = scmp.lt.s32.totalorder %s23_s16, %s23_s16 }
  0x2c   :  { %p547_p5 = scmp.ne.s32.totalorder %s23_s16, %s546_s12  ;;  %p552_p7 = scmp.lt.s32.totalorder %s546_s12, %s546_s12 }
  0x2e   :  { %p553_p8 = por %p552_p7, %p551_p6 }
  0x30   :  { %p554_p9 = pnand %p553_p8, %p547_p5 }
  0x32   :  { %557 = shalt.err (!%p554_p9)
}
  0x33   :  { %25 = dma.hbm_to_vmem [thread:$0]  %s777_s0, 128, %s23_s16, [#allocation3]  }
  0x34   :  { %s637_s14 = smov [#allocation7]   ;;  %s638_s17 = smov [#allocation10]  }
  0x35   :  { %s41_s15 = sshll.u32 %s637_s14, 4  ;;  %s67_s18 = sshll.u32 %s638_s17, 4  ;;  %s42_s15 = int_to_ptr.vmem [resolvable:$true] %s41_s15  ;;  %s68_s18 = int_to_ptr.vmem [resolvable:$true] %s67_s18 }
  0x36   :  { %s558_s21 = scalar_lea.hbm %s779_s2, 1024 }
  0x37   :  { %p559_p10 = scmp.ne.s32.totalorder %s779_s2, %s558_s21  ;;  %p562_p11 = scmp.lt.u32.totalorder %s558_s21, %s779_s2 }
  0x39   :  { %p564_p12 = pnand %p562_p11, %p559_p10 }
  0x3b   :  { %567 = shalt.err (!%p564_p12)
}
  0x3c   :  { %s568_s0 = scalar_lea.vmem %s42_s15, 1024  ;;  %p573_p0 = scmp.lt.s32.totalorder %s42_s15, %s42_s15 }
  0x3d   :  { %p569_p13 = scmp.ne.s32.totalorder %s42_s15, %s568_s0  ;;  %p574_p1 = scmp.lt.s32.totalorder %s568_s0, %s568_s0 }
  0x3f   :  { %p575_p2 = por %p574_p1, %p573_p0 }
  0x41   :  { %p576_p3 = pnand %p575_p2, %p569_p13 }
  0x43   :  { %579 = shalt.err (!%p576_p3)
}
  0x44   :  { %47 = dma.hbm_to_vmem [thread:$0]  %s779_s2, 1024, %s42_s15, [#allocation6], %s635_s24, %s635_s24, %s636_s25  }
  0x45   :  { %s580_s30 = scalar_lea.hbm %s782_s5, 1024 }
  0x46   :  { %p581_p4 = scmp.ne.s32.totalorder %s782_s5, %s580_s30  ;;  %p584_p5 = scmp.lt.u32.totalorder %s580_s30, %s782_s5 }
  0x48   :  { %p586_p6 = pnand %p584_p5, %p581_p4 }
  0x4a   :  { %589 = shalt.err (!%p586_p6)
}
  0x4b   :  { %s590_s12 = scalar_lea.vmem %s68_s18, 1024  ;;  %p595_p8 = scmp.lt.s32.totalorder %s68_s18, %s68_s18 }
  0x4c   :  { %p591_p7 = scmp.ne.s32.totalorder %s68_s18, %s590_s12  ;;  %p596_p9 = scmp.lt.s32.totalorder %s590_s12, %s590_s12 }
  0x4e   :  { %p597_p10 = por %p596_p9, %p595_p8 }
  0x50   :  { %p598_p11 = pnand %p597_p10, %p591_p7 }
  0x52   :  { %601 = shalt.err (!%p598_p11)
}
  0x53   :  { %73 = dma.hbm_to_vmem [thread:$0]  %s782_s5, 1024, %s68_s18, [#allocation9], %s635_s24, %s635_s24, %s636_s25  }
  0x54   :  { %624 = dma.done.wait [#allocation3], 128  }
  0x55   :  { %625 = vsyncadd [#allocation3], 4294967168 }
  0x56   :  { %626 = dma.done.wait [#allocation6], 1152  }
  0x57   :  { %627 = vsyncadd [#allocation6], 4294966144 }
  0x58   :  { %628 = dma.done.wait [#allocation9], 1536  }
  0x59   :  { %629 = vsyncadd [#allocation9], 4294965760  ;;  %v639_v0 = vmov 0.0|0.0   ;;  %vm640_vm0 = vmmov 0   ;;  %v641_v1 = vmov 0.0   ;;  %v92_v2 = vld [vmem:[#allocation7] sm:$0xff] }
  0x5a   :  { %456 = vmatprep.subr.bf16.mxu1 %v639_v0  ;;  %450 = vmatprep.subr.bf16.mxu0 %v639_v0  ;;  %v93_v3 = vld [vmem:[#allocation7 + $0x8] sm:$0xff]  ;;  %v94_v4 = vld [vmem:[#allocation7 + $0x10] sm:$0xff]  ;;  %v95_v6 = vld [vmem:[#allocation7 + $0x18] sm:$0xff]  ;;  %vm105_vm1 = vcmask 261120   ;;  %vm179_vm2 = vcmask 523264   ;;  %s642_s14 = smov 64  }
  0x5b   :  { %409 = vmatprep.mubr.msk.f32.mxu0 %vm640_vm0, %v641_v1  ;;  %428 = vmatprep.mubr.msk.f32.mxu1 %vm640_vm0, %v641_v1  ;;  %v457_v5 = vpack.c.bf16 %v93_v3, %v92_v2  ;;  %v101_v7 = vld [vmem:[#allocation8] sm:$0xff]  ;;  %v102_v8 = vld [vmem:[#allocation8 + $0x8] sm:$0xff]  ;;  %v103_v10 = vld [vmem:[#allocation8 + $0x10] sm:$0xff]  ;;  %v460_v11 = vpack.c.bf16 %v95_v6, %v94_v4  ;;  %s643_s15 = smov [#allocation11]  }
  0x5c   :  { %v451_v9 = vpack.c.bf16 %v102_v8, %v101_v7  ;;  %v104_v12 = vld [vmem:[#allocation8 + $0x18] sm:$0xff]  ;;  %v96_v13 = vld [vmem:[#allocation7 + $0x20] sm:$0xff]  ;;  %v97_v14 = vld [vmem:[#allocation7 + $0x28] sm:$0xff]  ;;  %s362_s17 = sshll.u32 %s643_s15, 4  ;;  %s363_s17 = int_to_ptr.vmem [resolvable:$true] %s362_s17 }
  0x5d   :  { %458 = vmatpush3.bf16.msra.mxu1 %v457_v5  ;;  %v454_v15 = vpack.c.bf16 %v104_v12, %v103_v10  ;;  %v262_v16 = vld [vmem:[#allocation10] sm:$0xff]  ;;  %v263_v17 = vld [vmem:[#allocation10 + $0x8] sm:$0xff]  ;;  %v463_v18 = vpack.c.bf16 %v97_v14, %v96_v13  ;;  %v98_v19 = vld [vmem:[#allocation7 + $0x30] sm:$0xff]  ;;  %p607_p13 = scmp.lt.s32.totalorder %s363_s17, %s363_s17 }
  0x5e   :  { %459 = vmatprep.subr.bf16.mxu1 %v639_v0  ;;  %452 = vmatpush3.bf16.msra.mxu0 %v451_v9  ;;  %v99_v20 = vld [vmem:[#allocation7 + $0x38] sm:$0xff]  ;;  %v469_v22 = vpack.c.bf16 %v263_v17, %v262_v16  ;;  %v264_v23 = vld [vmem:[#allocation10 + $0x10] sm:$0xff]  ;;  %v266_v28 = vld [vmem:[#allocation10 + $0x20] sm:$0xff] }
  0x5f   :  { %453 = vmatprep.subr.bf16.mxu0 %v639_v0  ;;  %v100_v21 = vld [vmem:[#allocation5] sm:$0xff]  ;;  %v466_v25 = vpack.c.bf16 %v99_v20, %v98_v19  ;;  %v91_v27 = vld [vmem:[#allocation2] sm:$0xff]  ;;  %v267_v29 = vld [vmem:[#allocation10 + $0x28] sm:$0xff] }
  0x60   :  { %v265_v24 = vld [vmem:[#allocation10 + $0x18] sm:$0xff]  ;;  %v475_v30 = vpack.c.bf16 %v267_v29, %v266_v28  ;;  %v268_v31 = vld [vmem:[#allocation10 + $0x30] sm:$0xff] }
  0x61   :  { %461 = vmatpush3.bf16.msra.mxu1 %v460_v11  ;;  %v472_v26 = vpack.c.bf16 %v265_v24, %v264_v23  ;;  %v269_v32 = vld [vmem:[#allocation10 + $0x38] sm:$0xff]  ;;  %v375_v37 = vld [vmem:[%s781_s4] ss:$0 sm:$0xff]  ;;  %s602_s4 = scalar_lea.vmem %s363_s17, 128 }
  0x62   :  { %462 = vmatprep.subr.bf16.mxu1 %v639_v0  ;;  %455 = vmatpush3.bf16.msra.mxu0 %v454_v15  ;;  %v478_v33 = vpack.c.bf16 %v269_v32, %v268_v31  ;;  %v376_v42 = vld [vmem:[%s783_s6] ss:$0 sm:$0xff]  ;;  %p603_p12 = scmp.ne.s32.totalorder %s363_s17, %s602_s4  ;;  %p608_p0 = scmp.lt.s32.totalorder %s602_s4, %s602_s4 }
  0x63   :  { %468 = vmatprep.subr.bf16.mxu0 %v639_v0 }
  0x64   :  { %p609_p1 = por %p608_p0, %p607_p13 }
  0x65   :  { %464 = vmatpush3.bf16.msra.mxu1 %v463_v18  ;;  %410 = vmatmul.mubr.msk.f32.vlgmr.msra.gmra.mrb[0].mxu0 %vm105_vm1, %v100_v21 }
  0x66   :  { %465 = vmatprep.subr.bf16.mxu1 %v639_v0  ;;  %470 = vmatpush3.bf16.msra.mxu0 %v469_v22  ;;  %p610_p2 = pnand %p609_p1, %p603_p12 }
  0x67   :  { %471 = vmatprep.subr.bf16.mxu0 %v639_v0  ;;  %447 = vmatprep.mubr.msk.f32.mxu0 %vm640_vm0, %v641_v1 }
  0x69   :  { %467 = vmatpush3.bf16.msra.mxu1 %v466_v25 }
  0x6a   :  { %473 = vmatpush3.bf16.msra.mxu0 %v472_v26 }
  0x6b   :  { %474 = vmatprep.subr.bf16.mxu0 %v639_v0 }
  0x6c   :  { %429 = vmatmul.mubr.msk.f32.vlgmr.msra.gmra.mrb[0].mxu1 %vm179_vm2, %v91_v27 }
  0x6e   :  { %476 = vmatpush3.bf16.msra.mxu0 %v475_v30 }
  0x6f   :  { %477 = vmatprep.subr.bf16.mxu0 %v639_v0 }
  0x72   :  { %479 = vmatpush3.bf16.msra.mxu0 %v478_v33 }
 0x138   :  { %v175_v34 = vpop.f32.mrb[0].mxu0 }
 0x139   :  { %v411_v35 = vpop.f32.mrb[1].mxu0 }
 0x13f   :  { %v249_v36 = vpop.f32.mrb[0].mxu1 }
 0x140   :  { %v250_v38 = vadd.f32 %v249_v36, %v175_v34  ;;  %v430_v39 = vpop.f32.mrb[1].mxu1 }
 0x142   :  { %v260_v40 = vadd.f32 %v375_v37, %v250_v38 }
 0x144   :  { %v261_v41 = vmax.f32 %v260_v40, 0.0 }
 0x146   :  { %448 = vmatmul.mubr.msk.f32.vlgmr.msra.gmra.mrb[2].mxu0 %vm179_vm2, %v261_v41 }
 0x219   :  { %v346_v43 = vpop.f32.mrb[2].mxu0 }
 0x21a   :  { %v347_v44 = vadd.f32 %v376_v42, %v346_v43  ;;  %v449_v45 = vpop.f32.mrb[3].mxu0 }
 0x21c   :  { %v350_v46 = vmax.f32 %v347_v44, 0.0 }
 0x21e   :  { %351 = vrot.lane.b32.xlu0 %v350_v46, %s642_s14 }
 0x290   :  { %v352_v47 = vpop.permute.xlu0 %351 }
 0x291   :  { %v353_v48 = vadd.f32 %v352_v47, %v350_v46 }
 0x293   :  { %v354_v49 = vmax.f32 %v353_v48, 0.0 }
 0x295   :  { %355 = vst.msk [vmem:[#allocation11] sm:$0xff] %vm179_vm2, %v354_v49 }
 0x296   :  { %613 = shalt.err (!%p610_p2)
}
 0x297   :  { %s614_s19 = scalar_lea.hbm %s784_s7, 128 }
 0x298   :  { %p615_p3 = scmp.ne.s32.totalorder %s784_s7, %s614_s19  ;;  %p618_p4 = scmp.lt.u32.totalorder %s614_s19, %s784_s7 }
 0x29a   :  { %p620_p5 = pnand %p618_p4, %p615_p3 }
 0x29c   :  { %623 = shalt.err (!%p620_p5)
}
 0x29d   :  { %365 = dma.vmem_to_hbm [thread:$0]  %s363_s17, 128, %s784_s7, [#allocation4]  }
 0x29e   :  { %630 = dma.done.wait [#allocation4], 128  }
 0x29f   :  { %631 = vsyncadd [#allocation4], 4294967168 }
 0x2a0   :  { %369 = vsyncpa [#allocation3], 1 }
 0x2a1   :  { %370 = vsyncpa [#allocation6], 1 }
 0x2a2   :  { %371 = vsyncpa [#allocation9], 1 }
 0x2a3   :  { %372 = vsyncpa [#allocation4], 1 }

</bundles_post_ra>
